<compile_context>
chip_gen: v5e
topology: v5e:2x2
jax: 0.10.0
libtpu: 0.0.40
codegen_flags: <defaults>
</compile_context>

<pallas_src>
import functools

import jax
import jax.numpy as jnp
from jax.experimental import pallas as pl
from jax.experimental.pallas import tpu as pltpu


def _round_up(x, m):
    return ((x + m - 1) // m) * m


# ----------------------------- Pallas kernel -------------------------------

def _bk_item_loading_kernel(idx_ref, table_ref, out_ref, *,
                            off_author, off_publisher, precision):
    """One grid step: gather-and-concat BB rows with a single MXU matmul.

    idx_ref:   (BB, 3) int32 tile of x2, columns = [author, year, publisher].
    table_ref: (N_total_pad, 3*D) f32 block-diagonal packed table, VMEM-resident:
                 rows [0, n_year)                -> cols [0,  D)    year
                 rows [n_year, n_year+n_author)  -> cols [D,  2D)   author
                 rows [.., n_total)              -> cols [2D, 3D)   publisher
    out_ref:   (BB, 3*D) f32 lane-dense output tile [year | author | publisher].
    """
    idx = idx_ref[...]                                   # (BB, 3)
    author_ids = idx[:, 0:1] + off_author                # (BB, 1)
    year_ids = idx[:, 1:2]
    publisher_ids = idx[:, 2:3] + off_publisher

    bb = idx.shape[0]
    n_total = table_ref.shape[0]
    iota = jax.lax.broadcasted_iota(jnp.int32, (bb, n_total), 1)
    onehot = ((iota == year_ids) | (iota == author_ids) | (iota == publisher_ids)
              ).astype(jnp.float32)                      # (BB, N_total), 3 ones/row

    # Single (BB, N_total) x (N_total, 3*D) matmul -> already-concatenated,
    # lane-dense row; one full-block store.  HIGHEST precision keeps the f32
    # table un-truncated so this matches a true embedding gather bit-for-bit.
    out_ref[...] = jnp.dot(onehot, table_ref[...],
                           preferred_element_type=jnp.float32,
                           precision=precision)


# ----------------------------- Wrapper --------------------------------------

def bk_item_loading(x2, emb_year, emb_author, emb_publisher):
    """x2: (B, 3) int [author, year, publisher]; tables (N_*, D) f32 -> (B, 3*D)."""
    B = x2.shape[0]
    D = emb_year.shape[1]
    assert emb_author.shape[1] == D and emb_publisher.shape[1] == D
    n_year, n_author, n_publisher = (
        emb_year.shape[0], emb_author.shape[0], emb_publisher.shape[0])

    x2 = x2.astype(jnp.int32)

    # Batch tiling: big tiles to amortize per-step overhead, but keep >= 2
    # "parallel" grid steps for large batches so both v7x TensorCores get work.
    BB = min(512, _round_up(max(B, 1), 8))
    if B >= 256 and _round_up(B, BB) // BB < 2:
        BB = _round_up((B + 1) // 2, 8)
    B_pad = _round_up(B, BB)
    if B_pad != B:
        x2 = jnp.pad(x2, ((0, B_pad - B), (0, 0)))   # index 0 always valid
    grid = (B_pad // BB,)

    # Pack the three tiny tables block-diagonally (build once per call here;
    # in a training loop this should be hoisted and reused across steps).
    n_total = n_year + n_author + n_publisher
    n_total_pad = _round_up(n_total, 8)
    packed = jnp.zeros((n_total_pad, 3 * D), jnp.float32)
    packed = packed.at[:n_year, 0:D].set(emb_year.astype(jnp.float32))
    packed = packed.at[n_year:n_year + n_author, D:2 * D].set(
        emb_author.astype(jnp.float32))
    packed = packed.at[n_year + n_author:n_total, 2 * D:3 * D].set(
        emb_publisher.astype(jnp.float32))

    table_bytes = 4 * n_total_pad * 3 * D
    cost = pl.CostEstimate(
        flops=2 * B_pad * n_total_pad * 3 * D,
        transcendentals=0,
        # x2 once + packed table once + un-padded lane-dense output.
        bytes_accessed=int(4 * B_pad * 3 + table_bytes + 4 * B_pad * 3 * D),
    )

    def _lanes(n):
        return _round_up(n, 128)

    def run(single_buffer_tables, precision):
        if single_buffer_tables:
            # Constant index_map => the second pipeline buffer is never used;
            # single-buffer the resident table to halve its VMEM footprint.
            table_spec = pl.BlockSpec((n_total_pad, 3 * D), lambda i: (0, 0),
                                      pipeline_mode=pl.Buffered(1))
            n_bufs = 1
        else:
            table_spec = pl.BlockSpec((n_total_pad, 3 * D), lambda i: (0, 0))
            n_bufs = 2

        # Explicit scoped-VMEM budget: v5e default is ~16 MiB, v7x physical is
        # only 64 MiB -- size the limit from actual need plus headroom.
        vmem_need = (n_bufs * 4 * n_total_pad * _lanes(3 * D)   # resident table
                     + 2 * BB * _lanes(3) * 4                   # x2 tiles
                     + 2 * BB * _lanes(3 * D) * 4               # output tiles
                     + 2 * BB * _lanes(n_total_pad) * 4)        # one-hot temps
        vmem_limit = int(min(60 << 20, max(16 << 20, vmem_need + (8 << 20))))

        kernel = functools.partial(
            _bk_item_loading_kernel,
            off_author=n_year,
            off_publisher=n_year + n_author,
            precision=precision)

        out2 = pl.pallas_call(
            kernel,
            grid=grid,
            in_specs=[
                pl.BlockSpec((BB, 3), lambda i: (i, 0)),        # x2 tile
                table_spec,                                     # packed table
            ],
            out_specs=pl.BlockSpec((BB, 3 * D), lambda i: (i, 0)),
            out_shape=jax.ShapeDtypeStruct((B_pad, 3 * D), jnp.float32),
            compiler_params=pltpu.CompilerParams(
                dimension_semantics=("parallel",),
                vmem_limit_bytes=vmem_limit),
            cost_estimate=cost,
        )(x2, packed)
        return jax.block_until_ready(out2)

    # Try the most-optimized config first; fall back only if the installed
    # Pallas rejects pl.Buffered(1) or precision=HIGHEST in this backend.
    configs = (
        dict(single_buffer_tables=True, precision=jax.lax.Precision.HIGHEST),
        dict(single_buffer_tables=False, precision=jax.lax.Precision.HIGHEST),
        dict(single_buffer_tables=False, precision=None),
    )
    last_err = None
    for cfg in configs:
        try:
            out2 = run(**cfg)
            break
        except Exception as e:   # pragma: no cover (API-compat fallback only)
            last_err = e
    else:
        raise last_err

    return out2[:B]


# ----------------------------- Parameter setup ------------------------------

def init_params(key, n_year, n_author, n_publisher, embedding_dim):
    k1, k2, k3 = jax.random.split(key, 3)
    # torch.nn.Embedding default init is N(0, 1); reproduce deterministically.
    emb_year = jax.random.normal(k1, (n_year, embedding_dim), jnp.float32)
    emb_author = jax.random.normal(k2, (n_author, embedding_dim), jnp.float32)
    emb_publisher = jax.random.normal(k3, (n_publisher, embedding_dim), jnp.float32)
    return emb_year, emb_author, emb_publisher


def _reference(x2, emb_year, emb_author, emb_publisher):
    author_idx, year_idx, publisher_idx = x2[:, 0], x2[:, 1], x2[:, 2]
    return jnp.concatenate(
        [emb_year[year_idx], emb_author[author_idx], emb_publisher[publisher_idx]],
        axis=1)


# --------------------------------- Main -------------------------------------

if __name__ == "__main__":
    # Small synthetic config (stand-in for config['n_year_bk'] etc.)
    n_year_bk = 16
    n_author = 64
    n_publisher = 32
    embedding_dim = 32

    key = jax.random.PRNGKey(0)
    kp, ki = jax.random.split(key)
    emb_year, emb_author, emb_publisher = init_params(
        kp, n_year_bk, n_author, n_publisher, embedding_dim)

    def make_x2(k, batch):
        ka, ky, kpub = jax.random.split(k, 3)
        author_idx = jax.random.randint(ka, (batch,), 0, n_author, jnp.int32)
        year_idx = jax.random.randint(ky, (batch,), 0, n_year_bk, jnp.int32)
        publisher_idx = jax.random.randint(kpub, (batch,), 0, n_publisher, jnp.int32)
        return jnp.stack([author_idx, year_idx, publisher_idx], axis=1)  # (B, 3)

    k1, k2 = jax.random.split(ki)
    # batch=8 is the basic case; batch=300 exercises batch padding and the
    # >=2-step "parallel" grid path (2-TC sharding on v7x).
    for batch, k in ((8, k1), (300, k2)):
        x2 = make_x2(k, batch)
        out = jax.block_until_ready(
            bk_item_loading(x2, emb_year, emb_author, emb_publisher))
        ref = _reference(x2, emb_year, emb_author, emb_publisher)
        assert out.shape == (batch, 3 * embedding_dim)
        assert jnp.allclose(out, ref, rtol=1e-6, atol=1e-6), (
            f"Pallas output mismatch vs reference (batch={batch})")

    print("KERNEL_OK")
</pallas_src>

<mosaic_0001>
module attributes {stable_mosaic.version = 11 : i64} {
  func.func @_bk_item_loading_kernel(%arg0: i32, %arg1: memref<8x3xi32, #tpu.memory_space<vmem>>, %arg2: memref<112x96xf32, #tpu.memory_space<vmem>>, %arg3: memref<8x96xf32, #tpu.memory_space<vmem>>) attributes {dimension_semantics = [#tpu.dimension_semantics<parallel>], iteration_bounds = array<i64: 1>, scalar_prefetch = 0 : i64, scratch_operands = 0 : i64, tpu.core_type = #tpu.core_type<tc>, window_params = [{transform_indices = @transform_0, window_bounds = array<i64: 8, 3>}, {pipeline_mode = #tpu.pipeline_mode<synchronous>, transform_indices = @transform_1, window_bounds = array<i64: 112, 96>}, {transform_indices = @transform_2, window_bounds = array<i64: 8, 96>}]} {
    %c0 = arith.constant 0 : index
    %c0_0 = arith.constant 0 : index
    %0 = vector.load %arg1[%c0, %c0_0] : memref<8x3xi32, #tpu.memory_space<vmem>>, vector<8x3xi32>
    %1 = vector.extract_strided_slice %0 {offsets = [0, 0], sizes = [8, 1], strides = [1, 1]} : vector<8x3xi32> to vector<8x1xi32>
    %c16_i32 = arith.constant 16 : i32
    %2 = vector.broadcast %c16_i32 : i32 to vector<8x1xi32>
    %3 = arith.addi %1, %2 : vector<8x1xi32>
    %4 = vector.extract_strided_slice %0 {offsets = [0, 1], sizes = [8, 1], strides = [1, 1]} : vector<8x3xi32> to vector<8x1xi32>
    %5 = vector.extract_strided_slice %0 {offsets = [0, 2], sizes = [8, 1], strides = [1, 1]} : vector<8x3xi32> to vector<8x1xi32>
    %c80_i32 = arith.constant 80 : i32
    %6 = vector.broadcast %c80_i32 : i32 to vector<8x1xi32>
    %7 = arith.addi %5, %6 : vector<8x1xi32>
    %8 = tpu.iota {dimensions = array<i32: 1>} : vector<8x112xi32>
    %9 = vector.broadcast %4 : vector<8x1xi32> to vector<8x112xi32>
    %10 = arith.cmpi eq, %8, %9 : vector<8x112xi32>
    %11 = vector.broadcast %3 : vector<8x1xi32> to vector<8x112xi32>
    %12 = arith.cmpi eq, %8, %11 : vector<8x112xi32>
    %13 = arith.ori %10, %12 : vector<8x112xi1>
    %14 = vector.broadcast %7 : vector<8x1xi32> to vector<8x112xi32>
    %15 = arith.cmpi eq, %8, %14 : vector<8x112xi32>
    %16 = arith.ori %13, %15 : vector<8x112xi1>
    %17 = arith.extui %16 : vector<8x112xi1> to vector<8x112xi32>
    %18 = arith.sitofp %17 : vector<8x112xi32> to vector<8x112xf32>
    %c0_1 = arith.constant 0 : index
    %c0_2 = arith.constant 0 : index
    %19 = vector.load %arg2[%c0_1, %c0_2] : memref<112x96xf32, #tpu.memory_space<vmem>>, vector<112x96xf32>
    %cst = arith.constant dense<0.000000e+00> : vector<8x96xf32>
    %20 = tpu.matmul %18, %19, %cst {dimension_numbers = #tpu.dot_dimension_numbers<[1], [0], [0], [1], [0, 0, 1, 1], [], []>, precision = #tpu.contract_precision<fp32>} : vector<8x112xf32>, vector<112x96xf32>, vector<8x96xf32> -> vector<8x96xf32>
    %c0_3 = arith.constant 0 : index
    %c0_4 = arith.constant 0 : index
    %21 = vector.load %arg3[%c0_3, %c0_4] : memref<8x96xf32, #tpu.memory_space<vmem>>, vector<8x96xf32>
    tpu.vector_store %arg3[%c0_3, %c0_4], %20 {strides = array<i32>} : memref<8x96xf32, #tpu.memory_space<vmem>>, vector<8x96xf32>,
    return
  }
  func.func @transform_0(%arg0: i32) -> (i32, i32) {
    %c0_i32 = arith.constant 0 : i32
    %c0_i32_0 = arith.constant 0 : i32
    return %arg0, %c0_i32 : i32, i32
  }
  func.func @transform_1(%arg0: i32) -> (i32, i32) {
    %c0_i32 = arith.constant 0 : i32
    %c0_i32_0 = arith.constant 0 : i32
    %c0_i32_1 = arith.constant 0 : i32
    return %c0_i32, %c0_i32_0 : i32, i32
  }
  func.func @transform_2(%arg0: i32) -> (i32, i32) {
    %c0_i32 = arith.constant 0 : i32
    %c0_i32_0 = arith.constant 0 : i32
    return %arg0, %c0_i32 : i32, i32
  }
}

module attributes {stable_mosaic.version = 11 : i64} {
  func.func @_bk_item_loading_kernel(%arg0: i32, %arg1: memref<8x3xi32, #tpu.memory_space<vmem>>, %arg2: memref<112x96xf32, #tpu.memory_space<vmem>>, %arg3: memref<8x96xf32, #tpu.memory_space<vmem>>) attributes {dimension_semantics = [#tpu.dimension_semantics<parallel>], iteration_bounds = array<i64: 1>, scalar_prefetch = 0 : i64, scratch_operands = 0 : i64, tpu.core_type = #tpu.core_type<tc>, window_params = [{transform_indices = @transform_0, window_bounds = array<i64: 8, 3>}, {pipeline_mode = #tpu.pipeline_mode<synchronous>, transform_indices = @transform_1, window_bounds = array<i64: 112, 96>}, {transform_indices = @transform_2, window_bounds = array<i64: 8, 96>}]} {
    %c0 = arith.constant 0 : index
    %c0_0 = arith.constant 0 : index
    %0 = vector.load %arg1[%c0, %c0_0] : memref<8x3xi32, #tpu.memory_space<vmem>>, vector<8x3xi32>
    %1 = vector.extract_strided_slice %0 {offsets = [0, 0], sizes = [8, 1], strides = [1, 1]} : vector<8x3xi32> to vector<8x1xi32>
    %c16_i32 = arith.constant 16 : i32
    %2 = vector.broadcast %c16_i32 : i32 to vector<8x1xi32>
    %3 = arith.addi %1, %2 : vector<8x1xi32>
    %4 = vector.extract_strided_slice %0 {offsets = [0, 1], sizes = [8, 1], strides = [1, 1]} : vector<8x3xi32> to vector<8x1xi32>
    %5 = vector.extract_strided_slice %0 {offsets = [0, 2], sizes = [8, 1], strides = [1, 1]} : vector<8x3xi32> to vector<8x1xi32>
    %c80_i32 = arith.constant 80 : i32
    %6 = vector.broadcast %c80_i32 : i32 to vector<8x1xi32>
    %7 = arith.addi %5, %6 : vector<8x1xi32>
    %8 = tpu.iota {dimensions = array<i32: 1>} : vector<8x112xi32>
    %9 = vector.broadcast %4 : vector<8x1xi32> to vector<8x112xi32>
    %10 = arith.cmpi eq, %8, %9 : vector<8x112xi32>
    %11 = vector.broadcast %3 : vector<8x1xi32> to vector<8x112xi32>
    %12 = arith.cmpi eq, %8, %11 : vector<8x112xi32>
    %13 = arith.ori %10, %12 : vector<8x112xi1>
    %14 = vector.broadcast %7 : vector<8x1xi32> to vector<8x112xi32>
    %15 = arith.cmpi eq, %8, %14 : vector<8x112xi32>
    %16 = arith.ori %13, %15 : vector<8x112xi1>
    %17 = arith.extui %16 : vector<8x112xi1> to vector<8x112xi32>
    %18 = arith.sitofp %17 : vector<8x112xi32> to vector<8x112xf32>
    %c0_1 = arith.constant 0 : index
    %c0_2 = arith.constant 0 : index
    %19 = vector.load %arg2[%c0_1, %c0_2] : memref<112x96xf32, #tpu.memory_space<vmem>>, vector<112x96xf32>
    %cst = arith.constant dense<0.000000e+00> : vector<8x96xf32>
    %20 = tpu.matmul %18, %19, %cst {dimension_numbers = #tpu.dot_dimension_numbers<[1], [0], [0], [1], [0, 0, 1, 1], [], []>, precision = #tpu.contract_precision<fp32>} : vector<8x112xf32>, vector<112x96xf32>, vector<8x96xf32> -> vector<8x96xf32>
    %c0_3 = arith.constant 0 : index
    %c0_4 = arith.constant 0 : index
    %21 = vector.load %arg3[%c0_3, %c0_4] : memref<8x96xf32, #tpu.memory_space<vmem>>, vector<8x96xf32>
    tpu.vector_store %arg3[%c0_3, %c0_4], %20 {strides = array<i32>} : memref<8x96xf32, #tpu.memory_space<vmem>>, vector<8x96xf32>,
    return
  }
  func.func @transform_0(%arg0: i32) -> (i32, i32) {
    %c0_i32 = arith.constant 0 : i32
    %c0_i32_0 = arith.constant 0 : i32
    return %arg0, %c0_i32 : i32, i32
  }
  func.func @transform_1(%arg0: i32) -> (i32, i32) {
    %c0_i32 = arith.constant 0 : i32
    %c0_i32_0 = arith.constant 0 : i32
    %c0_i32_1 = arith.constant 0 : i32
    return %c0_i32, %c0_i32_0 : i32, i32
  }
  func.func @transform_2(%arg0: i32) -> (i32, i32) {
    %c0_i32 = arith.constant 0 : i32
    %c0_i32_0 = arith.constant 0 : i32
    return %arg0, %c0_i32 : i32, i32
  }
}

module attributes {stable_mosaic.version = 11 : i64} {
  func.func @_bk_item_loading_kernel(%arg0: i32, %arg1: memref<8x3xi32, #tpu.memory_space<vmem>>, %arg2: memref<112x96xf32, #tpu.memory_space<vmem>>, %arg3: memref<8x96xf32, #tpu.memory_space<vmem>>) attributes {dimension_semantics = [#tpu.dimension_semantics<parallel>], iteration_bounds = array<i64: 1>, scalar_prefetch = 0 : i64, scratch_operands = 0 : i64, tpu.core_type = #tpu.core_type<tc>, window_params = [{transform_indices = @transform_0, window_bounds = array<i64: 8, 3>}, {pipeline_mode = #tpu.pipeline_mode<synchronous>, transform_indices = @transform_1, window_bounds = array<i64: 112, 96>}, {transform_indices = @transform_2, window_bounds = array<i64: 8, 96>}]} {
    %c0 = arith.constant 0 : index
    %c0_0 = arith.constant 0 : index
    %0 = vector.load %arg1[%c0, %c0_0] : memref<8x3xi32, #tpu.memory_space<vmem>>, vector<8x3xi32>
    %1 = vector.extract_strided_slice %0 {offsets = [0, 0], sizes = [8, 1], strides = [1, 1]} : vector<8x3xi32> to vector<8x1xi32>
    %c16_i32 = arith.constant 16 : i32
    %2 = vector.broadcast %c16_i32 : i32 to vector<8x1xi32>
    %3 = arith.addi %1, %2 : vector<8x1xi32>
    %4 = vector.extract_strided_slice %0 {offsets = [0, 1], sizes = [8, 1], strides = [1, 1]} : vector<8x3xi32> to vector<8x1xi32>
    %5 = vector.extract_strided_slice %0 {offsets = [0, 2], sizes = [8, 1], strides = [1, 1]} : vector<8x3xi32> to vector<8x1xi32>
    %c80_i32 = arith.constant 80 : i32
    %6 = vector.broadcast %c80_i32 : i32 to vector<8x1xi32>
    %7 = arith.addi %5, %6 : vector<8x1xi32>
    %8 = tpu.iota {dimensions = array<i32: 1>} : vector<8x112xi32>
    %9 = vector.broadcast %4 : vector<8x1xi32> to vector<8x112xi32>
    %10 = arith.cmpi eq, %8, %9 : vector<8x112xi32>
    %11 = vector.broadcast %3 : vector<8x1xi32> to vector<8x112xi32>
    %12 = arith.cmpi eq, %8, %11 : vector<8x112xi32>
    %13 = arith.ori %10, %12 : vector<8x112xi1>
    %14 = vector.broadcast %7 : vector<8x1xi32> to vector<8x112xi32>
    %15 = arith.cmpi eq, %8, %14 : vector<8x112xi32>
    %16 = arith.ori %13, %15 : vector<8x112xi1>
    %17 = arith.extui %16 : vector<8x112xi1> to vector<8x112xi32>
    %18 = arith.sitofp %17 : vector<8x112xi32> to vector<8x112xf32>
    %c0_1 = arith.constant 0 : index
    %c0_2 = arith.constant 0 : index
    %19 = vector.load %arg2[%c0_1, %c0_2] : memref<112x96xf32, #tpu.memory_space<vmem>>, vector<112x96xf32>
    %cst = arith.constant dense<0.000000e+00> : vector<8x96xf32>
    %20 = tpu.matmul %18, %19, %cst {dimension_numbers = #tpu.dot_dimension_numbers<[1], [0], [0], [1], [0, 0, 1, 1], [], []>} : vector<8x112xf32>, vector<112x96xf32>, vector<8x96xf32> -> vector<8x96xf32>
    %c0_3 = arith.constant 0 : index
    %c0_4 = arith.constant 0 : index
    %21 = vector.load %arg3[%c0_3, %c0_4] : memref<8x96xf32, #tpu.memory_space<vmem>>, vector<8x96xf32>
    tpu.vector_store %arg3[%c0_3, %c0_4], %20 {strides = array<i32>} : memref<8x96xf32, #tpu.memory_space<vmem>>, vector<8x96xf32>,
    return
  }
  func.func @transform_0(%arg0: i32) -> (i32, i32) {
    %c0_i32 = arith.constant 0 : i32
    %c0_i32_0 = arith.constant 0 : i32
    return %arg0, %c0_i32 : i32, i32
  }
  func.func @transform_1(%arg0: i32) -> (i32, i32) {
    %c0_i32 = arith.constant 0 : i32
    %c0_i32_0 = arith.constant 0 : i32
    %c0_i32_1 = arith.constant 0 : i32
    return %c0_i32, %c0_i32_0 : i32, i32
  }
  func.func @transform_2(%arg0: i32) -> (i32, i32) {
    %c0_i32 = arith.constant 0 : i32
    %c0_i32_0 = arith.constant 0 : i32
    return %arg0, %c0_i32 : i32, i32
  }
}

</mosaic_0001>

<bundles_post_ra>
// kernel: tpu_custom_call.1
= control target key start
LH: loop header
LB: loop body
LE: loop exit
PB: predicated region body
PF: predicated region fallthrough
CT: control target
= control target key end

     0   :  { %v423_v3 = vmov 1   ;;  %v424_v4 = vmov 2   ;;  %s686_s0 = inlined_call_operand.vmem [shape: s32[8,3], index: 0, kind: input, shape index: {}]   ;;  %s687_s1 = inlined_call_operand.vmem [shape: f32[112,96], index: 1, kind: input, shape index: {}]   ;;  %s688_s2 = inlined_call_operand.hbm [shape: f32[8,96], index: 2, kind: output, shape index: {}]  }
   0x1   :  { %v12_v0 = vld [vmem:[%s686_s0] sm:$0xff]  ;;  %v46_v1 = vld [vmem:[%s687_s1 + $0x68] sm:$0xff]  ;;  %393 = vset.pattern.permute.xlu0 %v423_v3  ;;  %395 = vset.pattern.permute.xlu1 %v424_v4  ;;  %v44_v8 = vld [vmem:[%s687_s1 + $0x58] sm:$0xff] }
   0x2   :  { %v45_v2 = vld [vmem:[%s687_s1 + $0x60] sm:$0xff]  ;;  %v14_v5 = vadd.s32 80, %v12_v0  ;;  %v453_v6 = vand.u32 4294901760, %v46_v1  ;;  %v43_v9 = vld [vmem:[%s687_s1 + $0x50] sm:$0xff]  ;;  %18 = vperm.xlu0 %393, %v12_v0   ;;  %v463_v10 = vand.u32 4294901760, %v44_v8  ;;  %v42_v12 = vld [vmem:[%s687_s1 + $0x48] sm:$0xff] }
   0x3   :  { %v455_v7 = vand.u32 4294901760, %v45_v2  ;;  %v465_v11 = vand.u32 4294901760, %v43_v9  ;;  %v41_v13 = vld [vmem:[%s687_s1 + $0x40] sm:$0xff]  ;;  %v40_v14 = vld [vmem:[%s687_s1 + $0x38] sm:$0xff]  ;;  %v482_v17 = vand.u32 4294901760, %v42_v12  ;;  %v39_v19 = vld [vmem:[%s687_s1 + $0x30] sm:$0xff] }
   0x4   :  { %27 = vperm.xlu1 %395, %v14_v5   ;;  %v477_v15 = vsub.f32 %v46_v1, %v453_v6  ;;  %54 = vmatpush.msra.mxu0 %v453_v6  ;;  %v485_v18 = vand.u32 4294901760, %v41_v13  ;;  %v491_v20 = vsub.f32 %v44_v8, %v463_v10  ;;  %v496_v22 = vand.u32 4294901760, %v40_v14 }
   0x5   :  { %v480_v16 = vsub.f32 %v45_v2, %v455_v7  ;;  %v494_v21 = vsub.f32 %v43_v9, %v465_v11  ;;  %v498_v23 = vand.u32 4294901760, %v39_v19  ;;  %234 = vmatpush.msra.mxu3 %v453_v6  ;;  %v504_v26 = vsub.f32 %v42_v12, %v482_v17 }
   0x6   :  { %v94_v24 = vand.u32 4294901760, %v477_v15  ;;  %v507_v27 = vsub.f32 %v41_v13, %v485_v18  ;;  %56 = vmatpush.msra.mxu0 %v455_v7  ;;  %185 = vmatpush.msra.mxu2 %v477_v15 }
   0x7   :  { %v100_v25 = vand.u32 4294901760, %v480_v16 }
   0x8   :  { %7 = vsyncpa [#allocation3], 0  ;;  %v106_v28 = vand.u32 4294901760, %v491_v20  ;;  %v112_v29 = vand.u32 4294901760, %v494_v21  ;;  %v514_v30 = vsub.f32 %v40_v14, %v496_v22  ;;  %236 = vmatpush.msra.mxu3 %v455_v7  ;;  %v13_v31 = vadd.s32 16, %v12_v0  ;;  %58 = vmatpush.msra.mxu0 %v463_v10  ;;  %v38_v38 = vld [vmem:[%s687_s1 + $0x28] sm:$0xff] }
   0x9   :  { %v95_v32 = vsub.f32 %v477_v15, %v94_v24  ;;  %v101_v33 = vsub.f32 %v480_v16, %v100_v25  ;;  %v118_v34 = vand.u32 4294901760, %v504_v26  ;;  %188 = vmatpush.msra.mxu2 %v480_v16  ;;  %v124_v36 = vand.u32 4294901760, %v507_v27  ;;  %v37_v39 = vld [vmem:[%s687_s1 + $0x20] sm:$0xff]  ;;  %v36_v43 = vld [vmem:[%s687_s1 + $0x18] sm:$0xff]  ;;  %v35_v46 = vld [vmem:[%s687_s1 + $0x10] sm:$0xff]  ;;  %s375_s13 = sshll.u32 %s688_s2, 4  ;;  %s376_s13 = int_to_ptr.hbm [resolvable:$true] %s375_s13 }
   0xa   :  { %v107_v35 = vsub.f32 %v491_v20, %v106_v28  ;;  %v531_v37 = vsub.f32 %v39_v19, %v498_v23  ;;  %238 = vmatpush.msra.mxu3 %v463_v10  ;;  %v113_v42 = vsub.f32 %v494_v21, %v112_v29  ;;  %60 = vmatpush.msra.mxu0 %v465_v11  ;;  %v425_v44 = vmov 0   ;;  %v34_v54 = vld [vmem:[%s687_s1 + $0x8] sm:$0xff]  ;;  %v33_v60 = vld [vmem:[%s687_s1] sm:$0xff]  ;;  %s427_s1 = smov [#allocation2]  }
   0xb   :  { %v96_v40 = vand.u32 4294901760, %v95_v32  ;;  %v102_v41 = vand.u32 4294901760, %v101_v33  ;;  %191 = vmatpush.msra.mxu2 %v491_v20  ;;  %394 = vset.pattern.permute.xlu0 %v425_v44  ;;  %v130_v45 = vand.u32 4294901760, %v514_v30  ;;  %v119_v48 = vsub.f32 %v504_v26, %v118_v34  ;;  %s373_s10 = sshll.u32 %s427_s1, 4  ;;  %s374_s10 = int_to_ptr.vmem [resolvable:$true] %s373_s10 }
   0xc   :  { %240 = vmatpush.msra.mxu3 %v465_v11  ;;  %22 = vperm.xlu0 %394, %v13_v31   ;;  %v108_v47 = vand.u32 4294901760, %v107_v35  ;;  %v556_v49 = vand.u32 4294901760, %v38_v38  ;;  %v558_v50 = vand.u32 4294901760, %v37_v39  ;;  %v125_v51 = vsub.f32 %v507_v27, %v124_v36 }
   0xd   :  { %97 = vmatpush.msra.mxu1 %v96_v40  ;;  %v136_v52 = vand.u32 4294901760, %v531_v37  ;;  %62 = vmatpush.msra.mxu0 %v482_v17  ;;  %v565_v53 = vand.u32 4294901760, %v36_v43  ;;  %v114_v55 = vand.u32 4294901760, %v113_v42  ;;  %v577_v58 = vand.u32 4294901760, %v35_v46 }
   0xe   :  { %194 = vmatpush.msra.mxu2 %v494_v21  ;;  %v572_v56 = vsub.f32 %v38_v38, %v556_v49  ;;  %v575_v57 = vsub.f32 %v37_v39, %v558_v50  ;;  %242 = vmatpush.msra.mxu3 %v482_v17  ;;  %v131_v59 = vsub.f32 %v514_v30, %v130_v45  ;;  %v120_v61 = vand.u32 4294901760, %v119_v48 }
   0xf   :  { %103 = vmatpush.msra.mxu1 %v102_v41  ;;  %64 = vmatpush.msra.mxu0 %v485_v18  ;;  %v590_v63 = vsub.f32 %v36_v43, %v565_v53  ;;  %v592_v0 = vand.u32 4294901760, %v34_v54  ;;  %v137_v1 = vsub.f32 %v531_v37, %v136_v52  ;;  %v126_v2 = vand.u32 4294901760, %v125_v51 }
  0x10   :  { %197 = vmatpush.msra.mxu2 %v504_v26  ;;  %v142_v62 = vand.u32 4294901760, %v572_v56  ;;  %244 = vmatpush.msra.mxu3 %v485_v18  ;;  %v148_v3 = vand.u32 4294901760, %v575_v57  ;;  %v602_v5 = vsub.f32 %v35_v46, %v577_v58  ;;  %v604_v8 = vand.u32 4294901760, %v33_v60 }
  0x11   :  { %109 = vmatpush.msra.mxu1 %v108_v47  ;;  %66 = vmatpush.msra.mxu0 %v496_v22  ;;  %v132_v9 = vand.u32 4294901760, %v131_v59  ;;  %v154_v13 = vand.u32 4294901760, %v590_v63  ;;  %v614_v14 = vsub.f32 %v34_v54, %v592_v0  ;;  %v138_v19 = vand.u32 4294901760, %v137_v1 }
  0x12   :  { %200 = vmatpush.msra.mxu2 %v507_v27  ;;  %246 = vmatpush.msra.mxu3 %v496_v22  ;;  %v143_v12 = vsub.f32 %v572_v56, %v142_v62  ;;  %v149_v31 = vsub.f32 %v575_v57, %v148_v3  ;;  %v160_v32 = vand.u32 4294901760, %v602_v5  ;;  %v171_v33 = vsub.f32 %v33_v60, %v604_v8 }
  0x13   :  { %115 = vmatpush.msra.mxu1 %v114_v55  ;;  %68 = vmatpush.msra.mxu0 %v498_v23  ;;  %v155_v38 = vsub.f32 %v590_v63, %v154_v13  ;;  %v166_v39 = vand.u32 4294901760, %v614_v14  ;;  %vm47_vm4 = vcmask 916480   ;;  %v426_v15 = vmov 0.0  }
  0x14   :  { %203 = vmatpush.msra.mxu2 %v514_v30  ;;  %248 = vmatpush.msra.mxu3 %v498_v23  ;;  %v144_v35 = vand.u32 4294901760, %v143_v12  ;;  %v150_v40 = vand.u32 4294901760, %v149_v31  ;;  %v161_v41 = vsub.f32 %v602_v5, %v160_v32  ;;  %v172_v42 = vand.u32 4294901760, %v171_v33 }
  0x15   :  { %121 = vmatpush.msra.mxu1 %v120_v61  ;;  %70 = vmatpush.msra.mxu0 %v556_v49  ;;  %v156_v43 = vand.u32 4294901760, %v155_v38  ;;  %v167_v44 = vsub.f32 %v614_v14, %v166_v39  ;;  %vm366_vm6 = vcmask 785408  }
  0x16   :  { %206 = vmatpush.msra.mxu2 %v531_v37  ;;  %250 = vmatpush.msra.mxu3 %v556_v49  ;;  %v162_v46 = vand.u32 4294901760, %v161_v41  ;;  %v173_v47 = vsub.f32 %v171_v33, %v172_v42 }
  0x17   :  { %127 = vmatpush.msra.mxu1 %v126_v2  ;;  %72 = vmatpush.msra.mxu0 %v558_v50  ;;  %v168_v48 = vand.u32 4294901760, %v167_v44 }
  0x18   :  { %209 = vmatpush.msra.mxu2 %v572_v56  ;;  %252 = vmatpush.msra.mxu3 %v558_v50  ;;  %v174_v51 = vand.u32 4294901760, %v173_v47 }
  0x19   :  { %133 = vmatpush.msra.mxu1 %v132_v9  ;;  %74 = vmatpush.msra.mxu0 %v565_v53 }
  0x1a   :  { %212 = vmatpush.msra.mxu2 %v575_v57  ;;  %254 = vmatpush.msra.mxu3 %v565_v53 }
  0x1b   :  { %139 = vmatpush.msra.mxu1 %v138_v19  ;;  %76 = vmatpush.msra.mxu0 %v577_v58 }
  0x1c   :  { %215 = vmatpush.msra.mxu2 %v590_v63  ;;  %256 = vmatpush.msra.mxu3 %v577_v58 }
  0x1d   :  { %145 = vmatpush.msra.mxu1 %v144_v35  ;;  %78 = vmatpush.msra.mxu0 %v592_v0 }
  0x1e   :  { %218 = vmatpush.msra.mxu2 %v602_v5  ;;  %258 = vmatpush.msra.mxu3 %v592_v0 }
  0x1f   :  { %151 = vmatpush.msra.mxu1 %v150_v40  ;;  %80 = vmatpush.msra.mxu0 %v604_v8 }
  0x20   :  { %221 = vmatpush.msra.mxu2 %v614_v14  ;;  %260 = vmatpush.msra.mxu3 %v604_v8 }
  0x21   :  { %157 = vmatpush.msra.mxu1 %v156_v43  ;;  %273 = vmatpush.msrb.mxu0 %v94_v24 }
  0x22   :  { %224 = vmatpush.msra.mxu2 %v171_v33  ;;  %396 = vset.pattern.permute.xlu0 %v424_v4 }
  0x23   :  { %163 = vmatpush.msra.mxu1 %v162_v46  ;;  %277 = vmatpush.msrb.mxu0 %v100_v25 }
  0x25   :  { %169 = vmatpush.msra.mxu1 %v168_v48  ;;  %281 = vmatpush.msrb.mxu0 %v106_v28 }
  0x27   :  { %175 = vmatpush.msra.mxu1 %v174_v51  ;;  %285 = vmatpush.msrb.mxu0 %v112_v29 }
  0x29   :  { %334 = vmatpush.msrb.mxu1 %v453_v6  ;;  %289 = vmatpush.msrb.mxu0 %v118_v34  ;;  %v15_v6 = vlaneseq }
  0x2b   :  { %336 = vmatpush.msrb.mxu1 %v455_v7  ;;  %293 = vmatpush.msrb.mxu0 %v124_v36  ;;  %v16_v7 = vand.u32 127, %v15_v6 }
  0x2d   :  { %338 = vmatpush.msrb.mxu1 %v463_v10  ;;  %297 = vmatpush.msrb.mxu0 %v130_v45 }
  0x2f   :  { %340 = vmatpush.msrb.mxu1 %v465_v11  ;;  %301 = vmatpush.msrb.mxu0 %v136_v52 }
  0x31   :  { %342 = vmatpush.msrb.mxu1 %v482_v17  ;;  %305 = vmatpush.msrb.mxu0 %v142_v62 }
  0x33   :  { %344 = vmatpush.msrb.mxu1 %v485_v18  ;;  %309 = vmatpush.msrb.mxu0 %v148_v3 }
  0x35   :  { %346 = vmatpush.msrb.mxu1 %v496_v22  ;;  %313 = vmatpush.msrb.mxu0 %v154_v13 }
  0x37   :  { %348 = vmatpush.msrb.mxu1 %v498_v23  ;;  %317 = vmatpush.msrb.mxu0 %v160_v32 }
  0x39   :  { %350 = vmatpush.msrb.mxu1 %v556_v49  ;;  %321 = vmatpush.msrb.mxu0 %v166_v39 }
  0x3b   :  { %352 = vmatpush.msrb.mxu1 %v558_v50  ;;  %325 = vmatpush.msrb.mxu0 %v172_v42 }
  0x3d   :  { %354 = vmatpush.msrb.mxu1 %v565_v53 }
  0x3f   :  { %356 = vmatpush.msrb.mxu1 %v577_v58 }
  0x41   :  { %358 = vmatpush.msrb.mxu1 %v592_v0 }
  0x43   :  { %360 = vmatpush.msrb.mxu1 %v604_v8 }
  0x74   :  { %v19_v4 = vpop.permute.xlu0 %18 }
  0x75   :  { %vm20_vm1 = vcmp.eq.s32.totalorder %v16_v7, %v19_v4 }
  0x76   :  { %v28_v10 = vpop.permute.xlu1 %27 }
  0x77   :  { %vm29_vm0 = vcmp.eq.s32.totalorder %v16_v7, %v28_v10 }
  0x7e   :  { %v23_v11 = vpop.permute.xlu0 %22 }
  0x7f   :  { %vm24_vm2 = vcmp.eq.s32.totalorder %v16_v7, %v23_v11 }
  0x80   :  { %vm25_vm3 = vmor %vm20_vm1, %vm24_vm2 }
  0x81   :  { %vm30_vm5 = vmor %vm25_vm3, %vm29_vm0 }
  0x82   :  { %v384_v16 = vsel %vm30_vm5, 1.0, %v426_v15 }
  0x83   :  { %385 = vmatmul.msk.f32.vlgmr.msra.gmra.mxu1 %vm47_vm4, %v384_v16  ;;  %v49_v17 = vsel %vm47_vm4, %v384_v16, 0 }
  0x84   :  { %v82_v18 = vsub.f32 %v49_v17, %v49_v17 }
  0x86   :  { %227 = vmatmul.f32.vlgmr.msra.gmra.mxu2 %v82_v18  ;;  %v83_v20 = vand.u32 4294901760, %v82_v18 }
  0x88   :  { %264 = vmatmul.f32.vlgmr.msra.gmra.mxu3 %v83_v20  ;;  %v84_v21 = vsub.f32 %v82_v18, %v83_v20 }
  0x8a   :  { %v85_v22 = vand.u32 4294901760, %v84_v21 }
  0x8b   :  { %387 = vmatmul.msk.f32.vlgmr.msrb.gmra.mxu1 %vm47_vm4, %v384_v16 }
  0x8c   :  { %86 = vmatmul.f32.vlgmr.msra.gmra.mxu0 %v85_v22 }
  0x94   :  { %386 = vmatmul.msk.f32.vlgmr.msrb.gmra.mxu0 %vm47_vm4, %v384_v16 }
 0x100   :  { %v178_v23 = vpop.f32.mrf.mxu1 }
 0x108   :  { %v363_v36 = vpop.f32.mrf.mxu1 }
 0x109   :  { %v87_v24 = vpop.f32.mrf.mxu0  ;;  %v228_v26 = vpop.f32.mrf.mxu2 }
 0x10a   :  { %v179_v25 = vadd.f32 %v178_v23, %v87_v24 }
 0x10b   :  { %v265_v28 = vpop.f32.mrf.mxu3 }
 0x10c   :  { %v229_v27 = vadd.f32 %v228_v26, %v179_v25 }
 0x10e   :  { %v266_v29 = vadd.f32 %v265_v28, %v229_v27 }
 0x111   :  { %v328_v30 = vpop.f32.mrf.mxu0 }
 0x112   :  { %v329_v34 = vadd.f32 %v328_v30, %v266_v29 }
 0x114   :  { %v364_v37 = vadd.f32 %v363_v36, %v329_v34 }
 0x116   :  { %367 = vst.msk [vmem:[#allocation2] sm:$0xff] %vm366_vm6, %v364_v37 }
 0x117   :  { %378 = dma.vmem_to_hbm [thread:$0]  %s374_s10, 128, %s376_s13, [#allocation3]  }
 0x118   :  { %421 = dma.done.wait [#allocation3], 128  }
 0x119   :  { %422 = vsyncadd [#allocation3], 4294967168 }
 0x11a   :  { %383 = vsyncpa [#allocation3], 1 }

// kernel: tpu_custom_call.1
= control target key start
LH: loop header
LB: loop body
LE: loop exit
PB: predicated region body
PF: predicated region fallthrough
CT: control target
= control target key end

     0   :  { %v423_v3 = vmov 1   ;;  %v424_v4 = vmov 2   ;;  %s686_s0 = inlined_call_operand.vmem [shape: s32[8,3], index: 0, kind: input, shape index: {}]   ;;  %s687_s1 = inlined_call_operand.vmem [shape: f32[112,96], index: 1, kind: input, shape index: {}]   ;;  %s688_s2 = inlined_call_operand.hbm [shape: f32[8,96], index: 2, kind: output, shape index: {}]  }
   0x1   :  { %v12_v0 = vld [vmem:[%s686_s0] sm:$0xff]  ;;  %v46_v1 = vld [vmem:[%s687_s1 + $0x68] sm:$0xff]  ;;  %393 = vset.pattern.permute.xlu0 %v423_v3  ;;  %395 = vset.pattern.permute.xlu1 %v424_v4  ;;  %v44_v8 = vld [vmem:[%s687_s1 + $0x58] sm:$0xff] }
   0x2   :  { %v45_v2 = vld [vmem:[%s687_s1 + $0x60] sm:$0xff]  ;;  %v14_v5 = vadd.s32 80, %v12_v0  ;;  %v453_v6 = vand.u32 4294901760, %v46_v1  ;;  %v43_v9 = vld [vmem:[%s687_s1 + $0x50] sm:$0xff]  ;;  %18 = vperm.xlu0 %393, %v12_v0   ;;  %v463_v10 = vand.u32 4294901760, %v44_v8  ;;  %v42_v12 = vld [vmem:[%s687_s1 + $0x48] sm:$0xff] }
   0x3   :  { %v455_v7 = vand.u32 4294901760, %v45_v2  ;;  %v465_v11 = vand.u32 4294901760, %v43_v9  ;;  %v41_v13 = vld [vmem:[%s687_s1 + $0x40] sm:$0xff]  ;;  %v40_v14 = vld [vmem:[%s687_s1 + $0x38] sm:$0xff]  ;;  %v482_v17 = vand.u32 4294901760, %v42_v12  ;;  %v39_v19 = vld [vmem:[%s687_s1 + $0x30] sm:$0xff] }
   0x4   :  { %27 = vperm.xlu1 %395, %v14_v5   ;;  %v477_v15 = vsub.f32 %v46_v1, %v453_v6  ;;  %54 = vmatpush.msra.mxu0 %v453_v6  ;;  %v485_v18 = vand.u32 4294901760, %v41_v13  ;;  %v491_v20 = vsub.f32 %v44_v8, %v463_v10  ;;  %v496_v22 = vand.u32 4294901760, %v40_v14 }
   0x5   :  { %v480_v16 = vsub.f32 %v45_v2, %v455_v7  ;;  %v494_v21 = vsub.f32 %v43_v9, %v465_v11  ;;  %v498_v23 = vand.u32 4294901760, %v39_v19  ;;  %234 = vmatpush.msra.mxu3 %v453_v6  ;;  %v504_v26 = vsub.f32 %v42_v12, %v482_v17 }
   0x6   :  { %v94_v24 = vand.u32 4294901760, %v477_v15  ;;  %v507_v27 = vsub.f32 %v41_v13, %v485_v18  ;;  %56 = vmatpush.msra.mxu0 %v455_v7  ;;  %185 = vmatpush.msra.mxu2 %v477_v15 }
   0x7   :  { %v100_v25 = vand.u32 4294901760, %v480_v16 }
   0x8   :  { %7 = vsyncpa [#allocation3], 0  ;;  %v106_v28 = vand.u32 4294901760, %v491_v20  ;;  %v112_v29 = vand.u32 4294901760, %v494_v21  ;;  %v514_v30 = vsub.f32 %v40_v14, %v496_v22  ;;  %236 = vmatpush.msra.mxu3 %v455_v7  ;;  %v13_v31 = vadd.s32 16, %v12_v0  ;;  %58 = vmatpush.msra.mxu0 %v463_v10  ;;  %v38_v38 = vld [vmem:[%s687_s1 + $0x28] sm:$0xff] }
   0x9   :  { %v95_v32 = vsub.f32 %v477_v15, %v94_v24  ;;  %v101_v33 = vsub.f32 %v480_v16, %v100_v25  ;;  %v118_v34 = vand.u32 4294901760, %v504_v26  ;;  %188 = vmatpush.msra.mxu2 %v480_v16  ;;  %v124_v36 = vand.u32 4294901760, %v507_v27  ;;  %v37_v39 = vld [vmem:[%s687_s1 + $0x20] sm:$0xff]  ;;  %v36_v43 = vld [vmem:[%s687_s1 + $0x18] sm:$0xff]  ;;  %v35_v46 = vld [vmem:[%s687_s1 + $0x10] sm:$0xff]  ;;  %s375_s13 = sshll.u32 %s688_s2, 4  ;;  %s376_s13 = int_to_ptr.hbm [resolvable:$true] %s375_s13 }
   0xa   :  { %v107_v35 = vsub.f32 %v491_v20, %v106_v28  ;;  %v531_v37 = vsub.f32 %v39_v19, %v498_v23  ;;  %238 = vmatpush.msra.mxu3 %v463_v10  ;;  %v113_v42 = vsub.f32 %v494_v21, %v112_v29  ;;  %60 = vmatpush.msra.mxu0 %v465_v11  ;;  %v425_v44 = vmov 0   ;;  %v34_v54 = vld [vmem:[%s687_s1 + $0x8] sm:$0xff]  ;;  %v33_v60 = vld [vmem:[%s687_s1] sm:$0xff]  ;;  %s427_s1 = smov [#allocation2]  }
   0xb   :  { %v96_v40 = vand.u32 4294901760, %v95_v32  ;;  %v102_v41 = vand.u32 4294901760, %v101_v33  ;;  %191 = vmatpush.msra.mxu2 %v491_v20  ;;  %394 = vset.pattern.permute.xlu0 %v425_v44  ;;  %v130_v45 = vand.u32 4294901760, %v514_v30  ;;  %v119_v48 = vsub.f32 %v504_v26, %v118_v34  ;;  %s373_s10 = sshll.u32 %s427_s1, 4  ;;  %s374_s10 = int_to_ptr.vmem [resolvable:$true] %s373_s10 }
   0xc   :  { %240 = vmatpush.msra.mxu3 %v465_v11  ;;  %22 = vperm.xlu0 %394, %v13_v31   ;;  %v108_v47 = vand.u32 4294901760, %v107_v35  ;;  %v556_v49 = vand.u32 4294901760, %v38_v38  ;;  %v558_v50 = vand.u32 4294901760, %v37_v39  ;;  %v125_v51 = vsub.f32 %v507_v27, %v124_v36 }
   0xd   :  { %97 = vmatpush.msra.mxu1 %v96_v40  ;;  %v136_v52 = vand.u32 4294901760, %v531_v37  ;;  %62 = vmatpush.msra.mxu0 %v482_v17  ;;  %v565_v53 = vand.u32 4294901760, %v36_v43  ;;  %v114_v55 = vand.u32 4294901760, %v113_v42  ;;  %v577_v58 = vand.u32 4294901760, %v35_v46 }
   0xe   :  { %194 = vmatpush.msra.mxu2 %v494_v21  ;;  %v572_v56 = vsub.f32 %v38_v38, %v556_v49  ;;  %v575_v57 = vsub.f32 %v37_v39, %v558_v50  ;;  %242 = vmatpush.msra.mxu3 %v482_v17  ;;  %v131_v59 = vsub.f32 %v514_v30, %v130_v45  ;;  %v120_v61 = vand.u32 4294901760, %v119_v48 }
   0xf   :  { %103 = vmatpush.msra.mxu1 %v102_v41  ;;  %64 = vmatpush.msra.mxu0 %v485_v18  ;;  %v590_v63 = vsub.f32 %v36_v43, %v565_v53  ;;  %v592_v0 = vand.u32 4294901760, %v34_v54  ;;  %v137_v1 = vsub.f32 %v531_v37, %v136_v52  ;;  %v126_v2 = vand.u32 4294901760, %v125_v51 }
  0x10   :  { %197 = vmatpush.msra.mxu2 %v504_v26  ;;  %v142_v62 = vand.u32 4294901760, %v572_v56  ;;  %244 = vmatpush.msra.mxu3 %v485_v18  ;;  %v148_v3 = vand.u32 4294901760, %v575_v57  ;;  %v602_v5 = vsub.f32 %v35_v46, %v577_v58  ;;  %v604_v8 = vand.u32 4294901760, %v33_v60 }
  0x11   :  { %109 = vmatpush.msra.mxu1 %v108_v47  ;;  %66 = vmatpush.msra.mxu0 %v496_v22  ;;  %v132_v9 = vand.u32 4294901760, %v131_v59  ;;  %v154_v13 = vand.u32 4294901760, %v590_v63  ;;  %v614_v14 = vsub.f32 %v34_v54, %v592_v0  ;;  %v138_v19 = vand.u32 4294901760, %v137_v1 }
  0x12   :  { %200 = vmatpush.msra.mxu2 %v507_v27  ;;  %246 = vmatpush.msra.mxu3 %v496_v22  ;;  %v143_v12 = vsub.f32 %v572_v56, %v142_v62  ;;  %v149_v31 = vsub.f32 %v575_v57, %v148_v3  ;;  %v160_v32 = vand.u32 4294901760, %v602_v5  ;;  %v171_v33 = vsub.f32 %v33_v60, %v604_v8 }
  0x13   :  { %115 = vmatpush.msra.mxu1 %v114_v55  ;;  %68 = vmatpush.msra.mxu0 %v498_v23  ;;  %v155_v38 = vsub.f32 %v590_v63, %v154_v13  ;;  %v166_v39 = vand.u32 4294901760, %v614_v14  ;;  %vm47_vm4 = vcmask 916480   ;;  %v426_v15 = vmov 0.0  }
  0x14   :  { %203 = vmatpush.msra.mxu2 %v514_v30  ;;  %248 = vmatpush.msra.mxu3 %v498_v23  ;;  %v144_v35 = vand.u32 4294901760, %v143_v12  ;;  %v150_v40 = vand.u32 4294901760, %v149_v31  ;;  %v161_v41 = vsub.f32 %v602_v5, %v160_v32  ;;  %v172_v42 = vand.u32 4294901760, %v171_v33 }
  0x15   :  { %121 = vmatpush.msra.mxu1 %v120_v61  ;;  %70 = vmatpush.msra.mxu0 %v556_v49  ;;  %v156_v43 = vand.u32 4294901760, %v155_v38  ;;  %v167_v44 = vsub.f32 %v614_v14, %v166_v39  ;;  %vm366_vm6 = vcmask 785408  }
  0x16   :  { %206 = vmatpush.msra.mxu2 %v531_v37  ;;  %250 = vmatpush.msra.mxu3 %v556_v49  ;;  %v162_v46 = vand.u32 4294901760, %v161_v41  ;;  %v173_v47 = vsub.f32 %v171_v33, %v172_v42 }
  0x17   :  { %127 = vmatpush.msra.mxu1 %v126_v2  ;;  %72 = vmatpush.msra.mxu0 %v558_v50  ;;  %v168_v48 = vand.u32 4294901760, %v167_v44 }
  0x18   :  { %209 = vmatpush.msra.mxu2 %v572_v56  ;;  %252 = vmatpush.msra.mxu3 %v558_v50  ;;  %v174_v51 = vand.u32 4294901760, %v173_v47 }
  0x19   :  { %133 = vmatpush.msra.mxu1 %v132_v9  ;;  %74 = vmatpush.msra.mxu0 %v565_v53 }
  0x1a   :  { %212 = vmatpush.msra.mxu2 %v575_v57  ;;  %254 = vmatpush.msra.mxu3 %v565_v53 }
  0x1b   :  { %139 = vmatpush.msra.mxu1 %v138_v19  ;;  %76 = vmatpush.msra.mxu0 %v577_v58 }
  0x1c   :  { %215 = vmatpush.msra.mxu2 %v590_v63  ;;  %256 = vmatpush.msra.mxu3 %v577_v58 }
  0x1d   :  { %145 = vmatpush.msra.mxu1 %v144_v35  ;;  %78 = vmatpush.msra.mxu0 %v592_v0 }
  0x1e   :  { %218 = vmatpush.msra.mxu2 %v602_v5  ;;  %258 = vmatpush.msra.mxu3 %v592_v0 }
  0x1f   :  { %151 = vmatpush.msra.mxu1 %v150_v40  ;;  %80 = vmatpush.msra.mxu0 %v604_v8 }
  0x20   :  { %221 = vmatpush.msra.mxu2 %v614_v14  ;;  %260 = vmatpush.msra.mxu3 %v604_v8 }
  0x21   :  { %157 = vmatpush.msra.mxu1 %v156_v43  ;;  %273 = vmatpush.msrb.mxu0 %v94_v24 }
  0x22   :  { %224 = vmatpush.msra.mxu2 %v171_v33  ;;  %396 = vset.pattern.permute.xlu0 %v424_v4 }
  0x23   :  { %163 = vmatpush.msra.mxu1 %v162_v46  ;;  %277 = vmatpush.msrb.mxu0 %v100_v25 }
  0x25   :  { %169 = vmatpush.msra.mxu1 %v168_v48  ;;  %281 = vmatpush.msrb.mxu0 %v106_v28 }
  0x27   :  { %175 = vmatpush.msra.mxu1 %v174_v51  ;;  %285 = vmatpush.msrb.mxu0 %v112_v29 }
  0x29   :  { %334 = vmatpush.msrb.mxu1 %v453_v6  ;;  %289 = vmatpush.msrb.mxu0 %v118_v34  ;;  %v15_v6 = vlaneseq }
  0x2b   :  { %336 = vmatpush.msrb.mxu1 %v455_v7  ;;  %293 = vmatpush.msrb.mxu0 %v124_v36  ;;  %v16_v7 = vand.u32 127, %v15_v6 }
  0x2d   :  { %338 = vmatpush.msrb.mxu1 %v463_v10  ;;  %297 = vmatpush.msrb.mxu0 %v130_v45 }
  0x2f   :  { %340 = vmatpush.msrb.mxu1 %v465_v11  ;;  %301 = vmatpush.msrb.mxu0 %v136_v52 }
  0x31   :  { %342 = vmatpush.msrb.mxu1 %v482_v17  ;;  %305 = vmatpush.msrb.mxu0 %v142_v62 }
  0x33   :  { %344 = vmatpush.msrb.mxu1 %v485_v18  ;;  %309 = vmatpush.msrb.mxu0 %v148_v3 }
  0x35   :  { %346 = vmatpush.msrb.mxu1 %v496_v22  ;;  %313 = vmatpush.msrb.mxu0 %v154_v13 }
  0x37   :  { %348 = vmatpush.msrb.mxu1 %v498_v23  ;;  %317 = vmatpush.msrb.mxu0 %v160_v32 }
  0x39   :  { %350 = vmatpush.msrb.mxu1 %v556_v49  ;;  %321 = vmatpush.msrb.mxu0 %v166_v39 }
  0x3b   :  { %352 = vmatpush.msrb.mxu1 %v558_v50  ;;  %325 = vmatpush.msrb.mxu0 %v172_v42 }
  0x3d   :  { %354 = vmatpush.msrb.mxu1 %v565_v53 }
  0x3f   :  { %356 = vmatpush.msrb.mxu1 %v577_v58 }
  0x41   :  { %358 = vmatpush.msrb.mxu1 %v592_v0 }
  0x43   :  { %360 = vmatpush.msrb.mxu1 %v604_v8 }
  0x74   :  { %v19_v4 = vpop.permute.xlu0 %18 }
  0x75   :  { %vm20_vm1 = vcmp.eq.s32.totalorder %v16_v7, %v19_v4 }
  0x76   :  { %v28_v10 = vpop.permute.xlu1 %27 }
  0x77   :  { %vm29_vm0 = vcmp.eq.s32.totalorder %v16_v7, %v28_v10 }
  0x7e   :  { %v23_v11 = vpop.permute.xlu0 %22 }
  0x7f   :  { %vm24_vm2 = vcmp.eq.s32.totalorder %v16_v7, %v23_v11 }
  0x80   :  { %vm25_vm3 = vmor %vm20_vm1, %vm24_vm2 }
  0x81   :  { %vm30_vm5 = vmor %vm25_vm3, %vm29_vm0 }
  0x82   :  { %v384_v16 = vsel %vm30_vm5, 1.0, %v426_v15 }
  0x83   :  { %385 = vmatmul.msk.f32.vlgmr.msra.gmra.mxu1 %vm47_vm4, %v384_v16  ;;  %v49_v17 = vsel %vm47_vm4, %v384_v16, 0 }
  0x84   :  { %v82_v18 = vsub.f32 %v49_v17, %v49_v17 }
  0x86   :  { %227 = vmatmul.f32.vlgmr.msra.gmra.mxu2 %v82_v18  ;;  %v83_v20 = vand.u32 4294901760, %v82_v18 }
  0x88   :  { %264 = vmatmul.f32.vlgmr.msra.gmra.mxu3 %v83_v20  ;;  %v84_v21 = vsub.f32 %v82_v18, %v83_v20 }
  0x8a   :  { %v85_v22 = vand.u32 4294901760, %v84_v21 }
  0x8b   :  { %387 = vmatmul.msk.f32.vlgmr.msrb.gmra.mxu1 %vm47_vm4, %v384_v16 }
  0x8c   :  { %86 = vmatmul.f32.vlgmr.msra.gmra.mxu0 %v85_v22 }
  0x94   :  { %386 = vmatmul.msk.f32.vlgmr.msrb.gmra.mxu0 %vm47_vm4, %v384_v16 }
 0x100   :  { %v178_v23 = vpop.f32.mrf.mxu1 }
 0x108   :  { %v363_v36 = vpop.f32.mrf.mxu1 }
 0x109   :  { %v87_v24 = vpop.f32.mrf.mxu0  ;;  %v228_v26 = vpop.f32.mrf.mxu2 }
 0x10a   :  { %v179_v25 = vadd.f32 %v178_v23, %v87_v24 }
 0x10b   :  { %v265_v28 = vpop.f32.mrf.mxu3 }
 0x10c   :  { %v229_v27 = vadd.f32 %v228_v26, %v179_v25 }
 0x10e   :  { %v266_v29 = vadd.f32 %v265_v28, %v229_v27 }
 0x111   :  { %v328_v30 = vpop.f32.mrf.mxu0 }
 0x112   :  { %v329_v34 = vadd.f32 %v328_v30, %v266_v29 }
 0x114   :  { %v364_v37 = vadd.f32 %v363_v36, %v329_v34 }
 0x116   :  { %367 = vst.msk [vmem:[#allocation2] sm:$0xff] %vm366_vm6, %v364_v37 }
 0x117   :  { %378 = dma.vmem_to_hbm [thread:$0]  %s374_s10, 128, %s376_s13, [#allocation3]  }
 0x118   :  { %421 = dma.done.wait [#allocation3], 128  }
 0x119   :  { %422 = vsyncadd [#allocation3], 4294967168 }
 0x11a   :  { %383 = vsyncpa [#allocation3], 1 }

// kernel: tpu_custom_call.1
= control target key start
LH: loop header
LB: loop body
LE: loop exit
PB: predicated region body
PF: predicated region fallthrough
CT: control target
= control target key end

     0   :  { %v126_v2 = vmov 1   ;;  %v127_v3 = vmov 2   ;;  %s194_s0 = inlined_call_operand.vmem [shape: s32[8,3], index: 0, kind: input, shape index: {}]   ;;  %s195_s1 = inlined_call_operand.vmem [shape: f32[112,96], index: 1, kind: input, shape index: {}]   ;;  %s196_s2 = inlined_call_operand.hbm [shape: f32[8,96], index: 2, kind: output, shape index: {}]  }
   0x1   :  { %v12_v0 = vld [vmem:[%s194_s0] sm:$0xff]  ;;  %v46_v1 = vld [vmem:[%s195_s1 + $0x68] sm:$0xff]  ;;  %96 = vset.pattern.permute.xlu0 %v126_v2  ;;  %98 = vset.pattern.permute.xlu1 %v127_v3 }
   0x2   :  { %v14_v4 = vadd.s32 80, %v12_v0  ;;  %v45_v5 = vld [vmem:[%s195_s1 + $0x60] sm:$0xff]  ;;  %18 = vperm.xlu0 %96, %v12_v0   ;;  %53 = vmatpush.msra.mxu0 %v46_v1 }
   0x3   :  { %7 = vsyncpa [#allocation3], 0  ;;  %v44_v6 = vld [vmem:[%s195_s1 + $0x58] sm:$0xff]  ;;  %v43_v7 = vld [vmem:[%s195_s1 + $0x50] sm:$0xff]  ;;  %v13_v8 = vadd.s32 16, %v12_v0  ;;  %v128_v11 = vmov 0   ;;  %v15_v21 = vlaneseq }
   0x4   :  { %27 = vperm.xlu1 %98, %v14_v4   ;;  %54 = vmatpush.msra.mxu0 %v45_v5  ;;  %v42_v9 = vld [vmem:[%s195_s1 + $0x48] sm:$0xff]  ;;  %v41_v10 = vld [vmem:[%s195_s1 + $0x40] sm:$0xff]  ;;  %v40_v12 = vld [vmem:[%s195_s1 + $0x38] sm:$0xff]  ;;  %vm47_vm4 = vcmask 916480   ;;  %v129_v25 = vmov 0.0   ;;  %s130_s10 = smov [#allocation2]  }
   0x5   :  { %v39_v13 = vld [vmem:[%s195_s1 + $0x30] sm:$0xff]  ;;  %v38_v14 = vld [vmem:[%s195_s1 + $0x28] sm:$0xff]  ;;  %v37_v15 = vld [vmem:[%s195_s1 + $0x20] sm:$0xff]  ;;  %v16_v22 = vand.u32 127, %v15_v21  ;;  %s78_s11 = sshll.u32 %s130_s10, 4  ;;  %vm71_vm6 = vcmask 785408   ;;  %s79_s11 = int_to_ptr.vmem [resolvable:$true] %s78_s11 }
   0x6   :  { %55 = vmatpush.msra.mxu0 %v44_v6  ;;  %v36_v16 = vld [vmem:[%s195_s1 + $0x18] sm:$0xff]  ;;  %v35_v17 = vld [vmem:[%s195_s1 + $0x10] sm:$0xff]  ;;  %v34_v18 = vld [vmem:[%s195_s1 + $0x8] sm:$0xff] }
   0x7   :  { %v33_v19 = vld [vmem:[%s195_s1] sm:$0xff]  ;;  %s80_s1 = sshll.u32 %s196_s2, 4  ;;  %s81_s1 = int_to_ptr.hbm [resolvable:$true] %s80_s1 }
   0x8   :  { %56 = vmatpush.msra.mxu0 %v43_v7 }
   0xa   :  { %97 = vset.pattern.permute.xlu0 %v128_v11  ;;  %57 = vmatpush.msra.mxu0 %v42_v9 }
   0xb   :  { %22 = vperm.xlu0 %97, %v13_v8  }
   0xc   :  { %58 = vmatpush.msra.mxu0 %v41_v10 }
   0xe   :  { %59 = vmatpush.msra.mxu0 %v40_v12 }
  0x10   :  { %60 = vmatpush.msra.mxu0 %v39_v13 }
  0x12   :  { %61 = vmatpush.msra.mxu0 %v38_v14 }
  0x13   :  { %99 = vset.pattern.permute.xlu0 %v127_v3 }
  0x14   :  { %62 = vmatpush.msra.mxu0 %v37_v15 }
  0x16   :  { %63 = vmatpush.msra.mxu0 %v36_v16 }
  0x18   :  { %64 = vmatpush.msra.mxu0 %v35_v17 }
  0x1a   :  { %65 = vmatpush.msra.mxu0 %v34_v18 }
  0x1c   :  { %66 = vmatpush.msra.mxu0 %v33_v19 }
  0x74   :  { %v19_v20 = vpop.permute.xlu0 %18 }
  0x75   :  { %vm20_vm1 = vcmp.eq.s32.totalorder %v16_v22, %v19_v20 }
  0x76   :  { %v28_v23 = vpop.permute.xlu1 %27 }
  0x77   :  { %vm29_vm0 = vcmp.eq.s32.totalorder %v16_v22, %v28_v23 }
  0x7d   :  { %v23_v24 = vpop.permute.xlu0 %22 }
  0x7e   :  { %vm24_vm2 = vcmp.eq.s32.totalorder %v16_v22, %v23_v24 }
  0x7f   :  { %vm25_vm3 = vmor %vm20_vm1, %vm24_vm2 }
  0x80   :  { %vm30_vm5 = vmor %vm25_vm3, %vm29_vm0 }
  0x81   :  { %v89_v26 = vsel %vm30_vm5, 1.0, %v129_v25 }
  0x82   :  { %90 = vmatmul.msk.f32.vlgmr.msra.gmra.mxu0 %vm47_vm4, %v89_v26 }
  0xff   :  { %v68_v27 = vpop.f32.mrf.mxu0 }
 0x100   :  { %72 = vst.msk [vmem:[#allocation2] sm:$0xff] %vm71_vm6, %v68_v27 }
 0x101   :  { %83 = dma.vmem_to_hbm [thread:$0]  %s79_s11, 128, %s81_s1, [#allocation3]  }
 0x102   :  { %124 = dma.done.wait [#allocation3], 128  }
 0x103   :  { %125 = vsyncadd [#allocation3], 4294967168 }
 0x104   :  { %88 = vsyncpa [#allocation3], 1 }

</bundles_post_ra>
